<compile_context>
chip_gen: v6e
topology: v6e:2x2x1
jax: 0.10.0
libtpu: 0.0.40
codegen_flags: <defaults>
</compile_context>

<pallas_src>
import jax
import jax.numpy as jnp
from jax import lax
from jax.experimental import pallas as pl
from jax.experimental.pallas import tpu as pltpu


def fused_gemv_kernel(x_ref, w_ref, b_ref, o_ref):
    # x_ref: (TB, F) f32 VMEM  -- batch tile of flattened images (streamed)
    # w_ref: (1, F)  f32 VMEM  -- fused weight row (resident across tiles)
    # b_ref: (1,)    f32 SMEM  -- fused scalar bias
    # o_ref: (1, TB) f32 VMEM  -- lane-dense output row for this tile
    acc = lax.dot_general(
        w_ref[...], x_ref[...],
        dimension_numbers=(((1,), (1,)), ((), ())),   # contract over F -> (1, TB)
        preferred_element_type=jnp.float32)
    o_ref[...] = (acc + b_ref[0]).astype(o_ref.dtype)


def _round_up(a, b):
    return (a + b - 1) // b * b


@jax.jit
def model_1_forward(x, w1, b1, w2, b2):
    """x: (B, H, W) float32; w1: (8, H*W); b1: (8,); w2: (1, 8); b2: (1,)."""
    B = x.shape[0]
    x_flat = jnp.reshape(x, (B, -1)).astype(jnp.float32)          # Flatten (glue)
    F = x_flat.shape[1]

    # Exact fusion of the two affine layers (kept in f32).
    w_comb = jnp.reshape(w2 @ w1, (1, F)).astype(jnp.float32)       # (1, F)
    b_comb = jnp.reshape(w2 @ b1 + b2, (1,)).astype(jnp.float32)    # scalar

    # ---- batch-tile selection: VMEM-budgeted, generation-safe ----
    # Double-buffered x tile (2 * TB * F * 4 B) kept under ~16 MiB; cap 4096 rows.
    VMEM_BUDGET = 16 * 1024 * 1024
    tb_cap = (VMEM_BUDGET // (2 * F * 4)) // 128 * 128
    tb_cap = max(128, min(4096, tb_cap))
    if B <= tb_cap:
        TB, G = B, 1                                   # one full-array tile
    else:
        # >= 2 parallel tiles (v7x: both TensorCores contribute HBM bandwidth),
        # TB a multiple of 128 so the (1, TB) output block stays lane-aligned.
        TB = min(tb_cap, _round_up(pl.cdiv(B, 2), 128))
        G = pl.cdiv(B, TB)

    out_row = pl.pallas_call(
        fused_gemv_kernel,
        out_shape=jax.ShapeDtypeStruct((1, G * TB), jnp.float32),
        grid=(G,),
        in_specs=[
            pl.BlockSpec((TB, F), lambda i: (i, 0)),             # x tile, streamed (ragged last tile OK)
            pl.BlockSpec((1, F), lambda i: (0, 0)),              # fused weight row, resident
            pl.BlockSpec(memory_space=pltpu.MemorySpace.SMEM),   # fused scalar bias
        ],
        out_specs=pl.BlockSpec((1, TB), lambda i: (0, i)),       # lane-dense output row
        compiler_params=pltpu.CompilerParams(
            dimension_semantics=("parallel",),
            vmem_limit_bytes=32 * 1024 * 1024),
    )(x_flat, w_comb, b_comb)

    # Columns >= B (ragged-tile garbage / padding) are sliced away here.
    return jnp.reshape(out_row[0, :B], (B, 1))


if __name__ == "__main__":
    img_size = 16
    B = 8
    F = img_size * img_size

    key = jax.random.PRNGKey(0)
    kx, kw1, kb1, kw2, kb2 = jax.random.split(key, 5)

    # Deterministic inputs / params (mimic nn.Linear uniform(-1/sqrt(fan_in), +)).
    x = jax.random.normal(kx, (B, img_size, img_size), dtype=jnp.float32)
    lim1 = 1.0 / jnp.sqrt(jnp.float32(F))
    w1 = jax.random.uniform(kw1, (8, F), jnp.float32, -lim1, lim1)
    b1 = jax.random.uniform(kb1, (8,), jnp.float32, -lim1, lim1)
    lim2 = 1.0 / jnp.sqrt(jnp.float32(8))
    w2 = jax.random.uniform(kw2, (1, 8), jnp.float32, -lim2, lim2)
    b2 = jax.random.uniform(kb2, (1,), jnp.float32, -lim2, lim2)

    out = model_1_forward(x, w1, b1, w2, b2)
    out = jax.block_until_ready(out)

    # Pure-JAX reference: the original (unfused) two-layer forward.
    ref = (x.reshape(B, F) @ w1.T + b1) @ w2.T + b2
    assert out.shape == (B, 1)
    assert jnp.allclose(out, ref, atol=1e-4, rtol=1e-4), (
        f"max abs err {jnp.max(jnp.abs(out - ref))}")

    print("KERNEL_OK")
</pallas_src>

<mosaic_0001>
module attributes {stable_mosaic.version = 11 : i64} {
  func.func @fused_gemv_kernel(%arg0: i32, %arg1: memref<8x256xf32, #tpu.memory_space<vmem>>, %arg2: memref<1x256xf32, #tpu.memory_space<vmem>>, %arg3: memref<1xf32, #tpu.memory_space<smem>>, %arg4: memref<1x8xf32, #tpu.memory_space<vmem>>) attributes {dimension_semantics = [#tpu.dimension_semantics<parallel>], iteration_bounds = array<i64: 1>, scalar_prefetch = 0 : i64, scratch_operands = 0 : i64, tpu.core_type = #tpu.core_type<tc>, window_params = [{transform_indices = @transform_0, window_bounds = array<i64: 8, 256>}, {pipeline_mode = #tpu.pipeline_mode<synchronous>, transform_indices = @transform_1, window_bounds = array<i64: 1, 256>}, {transform_indices = @transform_2, window_bounds = array<i64: 1>}, {transform_indices = @transform_3, window_bounds = array<i64: 1, 8>}]} {
    %c0 = arith.constant 0 : index
    %c0_0 = arith.constant 0 : index
    %0 = vector.load %arg2[%c0, %c0_0] : memref<1x256xf32, #tpu.memory_space<vmem>>, vector<1x256xf32>
    %c0_1 = arith.constant 0 : index
    %c0_2 = arith.constant 0 : index
    %1 = vector.load %arg1[%c0_1, %c0_2] : memref<8x256xf32, #tpu.memory_space<vmem>>, vector<8x256xf32>
    %cst = arith.constant dense<0.000000e+00> : vector<1x8xf32>
    %2 = tpu.matmul %0, %1, %cst {dimension_numbers = #tpu.dot_dimension_numbers<[1], [1], [0], [0], [0, 0, 1, 0], [], []>} : vector<1x256xf32>, vector<8x256xf32>, vector<1x8xf32> -> vector<1x8xf32>
    %c0_3 = arith.constant 0 : index
    %3 = memref.load %arg3[%c0_3] : memref<1xf32, #tpu.memory_space<smem>>
    %4 = vector.broadcast %3 : f32 to vector<1x8xf32>
    %5 = arith.addf %2, %4 : vector<1x8xf32>
    %c0_4 = arith.constant 0 : index
    %c0_5 = arith.constant 0 : index
    %6 = vector.load %arg4[%c0_4, %c0_5] : memref<1x8xf32, #tpu.memory_space<vmem>>, vector<1x8xf32>
    tpu.vector_store %arg4[%c0_4, %c0_5], %5 {strides = array<i32>} : memref<1x8xf32, #tpu.memory_space<vmem>>, vector<1x8xf32>,
    return
  }
  func.func @transform_0(%arg0: i32) -> (i32, i32) {
    %c0_i32 = arith.constant 0 : i32
    %c0_i32_0 = arith.constant 0 : i32
    return %arg0, %c0_i32 : i32, i32
  }
  func.func @transform_1(%arg0: i32) -> (i32, i32) {
    %c0_i32 = arith.constant 0 : i32
    %c0_i32_0 = arith.constant 0 : i32
    %c0_i32_1 = arith.constant 0 : i32
    return %c0_i32, %c0_i32_0 : i32, i32
  }
  func.func @transform_2(%arg0: i32) -> i32 {
    %c0_i32 = arith.constant 0 : i32
    %c0_i32_0 = arith.constant 0 : i32
    return %c0_i32 : i32
  }
  func.func @transform_3(%arg0: i32) -> (i32, i32) {
    %c0_i32 = arith.constant 0 : i32
    %c0_i32_0 = arith.constant 0 : i32
    return %c0_i32, %arg0 : i32, i32
  }
}

</mosaic_0001>

<bundles_post_ra>
// kernel: model_1_forward.1
= control target key start
LH: loop header
LB: loop body
LE: loop exit
PB: predicated region body
PF: predicated region fallthrough
CT: control target
= control target key end

     0   :  { %v22_v2 = vlaneseq  ;;  %s177_s0 = inlined_call_operand.vmem [shape: f32[8,256], index: 0, kind: input, shape index: {}]   ;;  %s178_s1 = inlined_call_operand.vmem [shape: f32[1,256], index: 1, kind: input, shape index: {}]   ;;  %s179_s2 = inlined_call_operand.<no memory space> [shape: f32[1], index: 2, kind: input, shape index: {}]   ;;  %s180_s3 = inlined_call_operand.hbm [shape: f32[1,8], index: 3, kind: output, shape index: {}]  }
   0x1   :  { %v18_v0 = vld [vmem:[%s177_s0 + $0x8] sm:$0xff]  ;;  %v17_v1 = vld [vmem:[%s177_s0] sm:$0xff] }
   0x2   :  { %62 = vmatprep.subr.mxu0 %v18_v0 }
   0x3   :  { %9 = vsyncpa [#allocation4], 0  ;;  %63 = vmatpush1.xpose.msra.mxu0 %v17_v1  ;;  %v23_v3 = vshrl.u32 %v22_v2, 7  ;;  %v16_v4 = vld [vmem:[%s178_s1] sm:$0x3]  ;;  %v20_v9 = vstv %s179_s2  ;;  %s141_s0 = smov [#allocation3]  }
   0x4   :  { %s110_s20 = sshll.u32 %s141_s0, 4  ;;  %vm102_vm0 = vcmask 57344   ;;  %s111_s20 = int_to_ptr.vmem [resolvable:$true] %s110_s20 }
   0x5   :  { %v24_v5 = vsub.s32 0, %v23_v3  ;;  %v28_v6 = vsub.s32 1, %v23_v3  ;;  %s119_s21 = scalar_lea.vmem %s111_s20, 16  ;;  %s123_s1 = scalar_lea.vmem %s111_s20, 32 }
   0x6   :  { %p120_p0 = scmp.ne.s32.totalorder %s111_s20, %s119_s21  ;;  %p124_p1 = scmp.lt.s32.totalorder %s111_s20, %s111_s20 }
   0x7   :  { %v25_v7 = vrot.slane %v16_v4, %v24_v5  ;;  %v29_v8 = vrot.slane %v16_v4, %v28_v6  ;;  %p125_p2 = scmp.lt.s32.totalorder %s123_s1, %s119_s21 }
   0x9   :  { %96 = vmatprep.mubr.f32.mxu0 %v29_v8  ;;  %p126_p3 = por %p125_p2, %p124_p1 }
   0xa   :  { %97 = vmatmul.mubr.f32.vlgmr.msra.gmra.mxu0 %v25_v7 }
   0xb   :  { %p127_p4 = pnand %p126_p3, %p120_p0 }
  0xca   :  { %v98_v10 = vpop.f32.mrf.mxu0 }
  0xcb   :  { %v99_v11 = vadd.f32 %v98_v10, %v20_v9 }
  0xcc   :  { %v100_v12 = vpop.f32.mrf.mxu0 }
  0xcd   :  { %103 = vst.msk [vmem:[#allocation3] sm:$0x1] %vm102_vm0, %v99_v11 }
  0xce   :  { %130 = shalt.err (!%p127_p4)
}
  0xcf   :  { %113 = dma.vmem_to_hbm [thread:$0]  %s111_s20, 16, %s180_s3, [#allocation4]  }
  0xd0   :  { %139 = dma.done.wait [#allocation4], 16  }
  0xd1   :  { %140 = vsyncadd [#allocation4], 4294967280 }
  0xd2   :  { %117 = vsyncpa [#allocation4], 1 }

</bundles_post_ra>
